<compile_context>
chip_gen: v7x
topology: tpu7x:2x2x1
jax: 0.10.0
libtpu: 0.0.40
codegen_flags: <defaults>
</compile_context>

<pallas_src>
import functools

import jax
import jax.numpy as jnp
import numpy as np
from jax import lax
from jax.experimental import pallas as pl
from jax.experimental.pallas import tpu as pltpu

LANES = 128      # lane width (last dim)
SUBLANES = 8     # sublane height of one vreg
TILE_R = 2048    # rows per grid step: (2048, 128) f32 block = 1 MiB / input
N_STATS = 6      # sum(p), sum(t), sum(p*t), sum(p*p), sum(t*t), sum(|p-t|)


def _num_tensorcores():
    # The 2-way leading "parallel" axis only helps on v7x (2 TCs per chip);
    # on v5e/v6e it just adds accumulator init/writeback and can force
    # per-step masking, so keep it at 1 there.
    try:
        kind = jax.devices()[0].device_kind.lower()
        if "v7" in kind:
            return 2
    except Exception:
        pass
    return 1


NCORES = _num_tensorcores()


def _make_stats_call(rows_total, block_rows, num_blocks, blocks_per_core,
                     needs_mask):
    """Builds the pallas_call producing per-core (6, 8, 128) partial sums of
    the six statistics needed for Pearson correlation + MAE."""
    sub_blocks = block_rows // SUBLANES

    def in_map(c, j):
        blk = c * blocks_per_core + j
        # Clamp so the DMA never walks past the last block of the array; any
        # duplicated / out-of-range rows are zeroed by the in-kernel mask.
        return (jnp.minimum(blk, num_blocks - 1), 0)

    def kernel(p_ref, t_ref, acc_ref):
        c = pl.program_id(0)
        j = pl.program_id(1)

        @pl.when(j == 0)
        def _():
            acc_ref[...] = jnp.zeros_like(acc_ref)

        p = p_ref[...].astype(jnp.float32)
        t = t_ref[...].astype(jnp.float32)

        def accumulate(pv, tv):
            # In-register fold to one vreg per stat: the reshape does not
            # cross (8,128) tile boundaries (free), the sum over axis 0 is
            # pure VPU adds, and only six (8,128) partials are read-modify-
            # written per step — accumulator VMEM traffic is negligible next
            # to the input stream, so the kernel stays HBM-bound.
            def fold(x):
                return jnp.sum(x.reshape(sub_blocks, SUBLANES, LANES), axis=0)
            acc_ref[0] += fold(pv)
            acc_ref[1] += fold(tv)
            acc_ref[2] += fold(pv * tv)
            acc_ref[3] += fold(pv * pv)
            acc_ref[4] += fold(tv * tv)
            acc_ref[5] += fold(jnp.abs(pv - tv))

        if not needs_mask:
            accumulate(p, t)
        else:
            blk = c * blocks_per_core + j
            block_end = (blk + 1) * block_rows

            @pl.when(block_end <= rows_total)
            def _():
                # Fast path: block fully in range, no mask cost.
                accumulate(p, t)

            @pl.when(block_end > rows_total)
            def _():
                # Tail / duplicated clamped block: mask BEFORE any products so
                # garbage (even NaN/Inf) in the padded region cannot leak in,
                # and duplicated blocks contribute exactly zero.
                rows = blk * block_rows + lax.broadcasted_iota(
                    jnp.int32, p.shape, 0)
                valid = rows < rows_total
                accumulate(jnp.where(valid, p, 0.0),
                           jnp.where(valid, t, 0.0))

    in_spec = pl.BlockSpec((block_rows, LANES), in_map)
    out_spec = pl.BlockSpec((None, N_STATS, SUBLANES, LANES),
                            lambda c, j: (c, 0, 0, 0))

    return pl.pallas_call(
        kernel,
        out_shape=jax.ShapeDtypeStruct(
            (NCORES, N_STATS, SUBLANES, LANES), jnp.float32),
        grid=(NCORES, blocks_per_core),
        in_specs=[in_spec, in_spec],
        out_specs=out_spec,
        compiler_params=pltpu.CompilerParams(
            dimension_semantics=("parallel", "arbitrary")),
    )


def _run_stats(pred2d, target2d):
    rows_total = pred2d.shape[0]               # always a multiple of SUBLANES
    block_rows = min(TILE_R, rows_total)       # full-array block if small
    num_blocks = pl.cdiv(rows_total, block_rows)
    blocks_per_core = pl.cdiv(num_blocks, NCORES)
    needs_mask = (rows_total % block_rows != 0) or (num_blocks % NCORES != 0)
    call = _make_stats_call(rows_total, block_rows, num_blocks,
                            blocks_per_core, needs_mask)
    return call(pred2d, target2d)


@functools.partial(jax.jit, static_argnames=("alpha", "beta"))
def combined_pearson_mae_loss(predicted, target, alpha=0.5, beta=0.5):
    n_elems = predicted.size
    p = predicted.reshape(-1)   # native dtype; upcast happens inside the kernel
    t = target.reshape(-1)

    # Pad only a sub-(8x128) remainder; typical NCHW sizes (and the test
    # shape) are multiples of 1024, so no copy is made.  Zero padding
    # contributes nothing to any of the six sums and N uses the true count.
    tile_elems = SUBLANES * LANES
    rem = n_elems % tile_elems
    if rem:
        # TODO(synk): rare fallback; jnp.pad materializes a copy of the inputs.
        p = jnp.pad(p, (0, tile_elems - rem))
        t = jnp.pad(t, (0, tile_elems - rem))

    rows_total = p.shape[0] // LANES
    p2d = p.reshape(rows_total, LANES)
    t2d = t.reshape(rows_total, LANES)

    acc = _run_stats(p2d, t2d)                 # (NCORES, 6, 8, 128)
    s = jnp.sum(acc, axis=(0, 2, 3))           # (6,) — tiny XLA reduce

    # Scalar finalization (glue; cheap). Zero-masked rows contribute nothing,
    # so the true element count N is used here.
    # TODO(synk): the single-pass E[xy]-N*mx*my form in f32 can lose precision
    # for huge tensors with large non-zero means; fine at these scales.
    N = jnp.float32(n_elems)
    s_p, s_t, s_pt, s_pp, s_tt, s_abs = s[0], s[1], s[2], s[3], s[4], s[5]

    mean_p = s_p / N
    mean_t = s_t / N
    numerator = s_pt - N * mean_p * mean_t                 # sum((p-mp)*(t-mt))
    var_p = jnp.maximum(s_pp - N * mean_p * mean_p, 0.0)   # sum((p-mp)^2)
    var_t = jnp.maximum(s_tt - N * mean_t * mean_t, 0.0)   # sum((t-mt)^2)
    denominator = jnp.sqrt(var_p * var_t)
    r = numerator / (denominator + 1e-6)
    pearson_loss = jnp.clip(1.0 - r, 0.0, 2.0)
    mae_loss = s_abs / N
    return alpha * pearson_loss + beta * mae_loss


def _reference(predicted, target, alpha=0.5, beta=0.5):
    p = np.asarray(predicted, dtype=np.float64)
    t = np.asarray(target, dtype=np.float64)
    mp, mt = p.mean(), t.mean()
    num = np.sum((p - mp) * (t - mt))
    den = np.sqrt(np.sum((p - mp) ** 2) * np.sum((t - mt) ** 2))
    r = num / (den + 1e-6)
    pearson = np.clip(1.0 - r, 0.0, 2.0)
    mae = np.mean(np.abs(p - t))
    return alpha * pearson + beta * mae


if __name__ == "__main__":
    key = jax.random.PRNGKey(0)
    k1, k2 = jax.random.split(key)
    # Small NCHW-style shapes: batch=2, channels=4, spatial=16x16
    shape = (2, 4, 16, 16)
    predicted = jax.random.normal(k1, shape, dtype=jnp.float32)
    target = 0.7 * predicted + 0.3 * jax.random.normal(k2, shape, dtype=jnp.float32)

    loss = combined_pearson_mae_loss(predicted, target)
    loss = jax.block_until_ready(loss)

    ref = _reference(predicted, target)
    assert np.allclose(float(loss), ref, rtol=1e-4, atol=1e-5), (float(loss), ref)
    print("KERNEL_OK")
</pallas_src>

<mosaic_0001>
module attributes {stable_mosaic.version = 11 : i64} {
  func.func @kernel(%arg0: i32, %arg1: i32, %arg2: memref<16x128xf32, #tpu.memory_space<vmem>>, %arg3: memref<16x128xf32, #tpu.memory_space<vmem>>, %arg4: memref<1x6x8x128xf32, #tpu.memory_space<vmem>>) attributes {dimension_semantics = [#tpu.dimension_semantics<parallel>, #tpu.dimension_semantics<arbitrary>], iteration_bounds = array<i64: 1, 1>, scalar_prefetch = 0 : i64, scratch_operands = 0 : i64, tpu.core_type = #tpu.core_type<tc>, window_params = [{transform_indices = @transform_0, window_bounds = array<i64: 16, 128>}, {transform_indices = @transform_1, window_bounds = array<i64: 16, 128>}, {transform_indices = @transform_2, window_bounds = array<i64: 1, 6, 8, 128>}]} {
    %c0_i32 = arith.constant 0 : i32
    %0 = arith.cmpi eq, %arg1, %c0_i32 : i32
    %1 = arith.extui %0 : i1 to i32
    %c0_i32_0 = arith.constant 0 : i32
    %2 = arith.cmpi ne, %1, %c0_i32_0 : i32
    scf.if %2 {
      %cst_52 = arith.constant 0.000000e+00 : f32
      %58 = vector.broadcast %cst_52 : f32 to vector<6x8x128xf32>
      %c0_53 = arith.constant 0 : index
      %c0_54 = arith.constant 0 : index
      %c0_55 = arith.constant 0 : index
      %c0_56 = arith.constant 0 : index
      %59 = vector.load %arg4[%c0_53, %c0_54, %c0_55, %c0_56] : memref<1x6x8x128xf32, #tpu.memory_space<vmem>>, vector<1x6x8x128xf32>
      %60 = vector.shape_cast %59 : vector<1x6x8x128xf32> to vector<6x8x128xf32>
      %61 = vector.shape_cast %58 : vector<6x8x128xf32> to vector<1x6x8x128xf32>
      tpu.vector_store %arg4[%c0_53, %c0_54, %c0_55, %c0_56], %61 {strides = array<i32>} : memref<1x6x8x128xf32, #tpu.memory_space<vmem>>, vector<1x6x8x128xf32>,
    } else {
    }
    %c0 = arith.constant 0 : index
    %c0_1 = arith.constant 0 : index
    %3 = vector.load %arg2[%c0, %c0_1] : memref<16x128xf32, #tpu.memory_space<vmem>>, vector<16x128xf32>
    %c0_2 = arith.constant 0 : index
    %c0_3 = arith.constant 0 : index
    %4 = vector.load %arg3[%c0_2, %c0_3] : memref<16x128xf32, #tpu.memory_space<vmem>>, vector<16x128xf32>
    %c0_4 = arith.constant 0 : index
    %c0_5 = arith.constant 0 : index
    %c0_6 = arith.constant 0 : index
    %c0_7 = arith.constant 0 : index
    %5 = vector.load %arg4[%c0_4, %c0_5, %c0_6, %c0_7] : memref<1x6x8x128xf32, #tpu.memory_space<vmem>>, vector<1x1x8x128xf32>
    %6 = vector.shape_cast %5 : vector<1x1x8x128xf32> to vector<8x128xf32>
    %7 = vector.shape_cast %3 : vector<16x128xf32> to vector<2x8x128xf32>
    %cst = arith.constant dense<0.000000e+00> : vector<8x128xf32>
    %8 = vector.multi_reduction <add>, %7, %cst [0] : vector<2x8x128xf32> to vector<8x128xf32>
    %9 = arith.addf %6, %8 : vector<8x128xf32>
    %c0_8 = arith.constant 0 : index
    %c0_9 = arith.constant 0 : index
    %c0_10 = arith.constant 0 : index
    %c0_11 = arith.constant 0 : index
    %10 = vector.load %arg4[%c0_8, %c0_9, %c0_10, %c0_11] : memref<1x6x8x128xf32, #tpu.memory_space<vmem>>, vector<1x1x8x128xf32>
    %11 = vector.shape_cast %10 : vector<1x1x8x128xf32> to vector<8x128xf32>
    %12 = vector.shape_cast %9 : vector<8x128xf32> to vector<1x1x8x128xf32>
    tpu.vector_store %arg4[%c0_8, %c0_9, %c0_10, %c0_11], %12 {strides = array<i32>} : memref<1x6x8x128xf32, #tpu.memory_space<vmem>>, vector<1x1x8x128xf32>,
    %c0_12 = arith.constant 0 : index
    %c1 = arith.constant 1 : index
    %c0_13 = arith.constant 0 : index
    %c0_14 = arith.constant 0 : index
    %13 = vector.load %arg4[%c0_12, %c1, %c0_13, %c0_14] : memref<1x6x8x128xf32, #tpu.memory_space<vmem>>, vector<1x1x8x128xf32>
    %14 = vector.shape_cast %13 : vector<1x1x8x128xf32> to vector<8x128xf32>
    %15 = vector.shape_cast %4 : vector<16x128xf32> to vector<2x8x128xf32>
    %cst_15 = arith.constant dense<0.000000e+00> : vector<8x128xf32>
    %16 = vector.multi_reduction <add>, %15, %cst_15 [0] : vector<2x8x128xf32> to vector<8x128xf32>
    %17 = arith.addf %14, %16 : vector<8x128xf32>
    %c0_16 = arith.constant 0 : index
    %c1_17 = arith.constant 1 : index
    %c0_18 = arith.constant 0 : index
    %c0_19 = arith.constant 0 : index
    %18 = vector.load %arg4[%c0_16, %c1_17, %c0_18, %c0_19] : memref<1x6x8x128xf32, #tpu.memory_space<vmem>>, vector<1x1x8x128xf32>
    %19 = vector.shape_cast %18 : vector<1x1x8x128xf32> to vector<8x128xf32>
    %20 = vector.shape_cast %17 : vector<8x128xf32> to vector<1x1x8x128xf32>
    tpu.vector_store %arg4[%c0_16, %c1_17, %c0_18, %c0_19], %20 {strides = array<i32>} : memref<1x6x8x128xf32, #tpu.memory_space<vmem>>, vector<1x1x8x128xf32>,
    %c0_20 = arith.constant 0 : index
    %c2 = arith.constant 2 : index
    %c0_21 = arith.constant 0 : index
    %c0_22 = arith.constant 0 : index
    %21 = vector.load %arg4[%c0_20, %c2, %c0_21, %c0_22] : memref<1x6x8x128xf32, #tpu.memory_space<vmem>>, vector<1x1x8x128xf32>
    %22 = vector.shape_cast %21 : vector<1x1x8x128xf32> to vector<8x128xf32>
    %23 = arith.mulf %3, %4 : vector<16x128xf32>
    %24 = vector.shape_cast %23 : vector<16x128xf32> to vector<2x8x128xf32>
    %cst_23 = arith.constant dense<0.000000e+00> : vector<8x128xf32>
    %25 = vector.multi_reduction <add>, %24, %cst_23 [0] : vector<2x8x128xf32> to vector<8x128xf32>
    %26 = arith.addf %22, %25 : vector<8x128xf32>
    %c0_24 = arith.constant 0 : index
    %c2_25 = arith.constant 2 : index
    %c0_26 = arith.constant 0 : index
    %c0_27 = arith.constant 0 : index
    %27 = vector.load %arg4[%c0_24, %c2_25, %c0_26, %c0_27] : memref<1x6x8x128xf32, #tpu.memory_space<vmem>>, vector<1x1x8x128xf32>
    %28 = vector.shape_cast %27 : vector<1x1x8x128xf32> to vector<8x128xf32>
    %29 = vector.shape_cast %26 : vector<8x128xf32> to vector<1x1x8x128xf32>
    tpu.vector_store %arg4[%c0_24, %c2_25, %c0_26, %c0_27], %29 {strides = array<i32>} : memref<1x6x8x128xf32, #tpu.memory_space<vmem>>, vector<1x1x8x128xf32>,
    %c0_28 = arith.constant 0 : index
    %c3 = arith.constant 3 : index
    %c0_29 = arith.constant 0 : index
    %c0_30 = arith.constant 0 : index
    %30 = vector.load %arg4[%c0_28, %c3, %c0_29, %c0_30] : memref<1x6x8x128xf32, #tpu.memory_space<vmem>>, vector<1x1x8x128xf32>
    %31 = vector.shape_cast %30 : vector<1x1x8x128xf32> to vector<8x128xf32>
    %32 = arith.mulf %3, %3 : vector<16x128xf32>
    %33 = vector.shape_cast %32 : vector<16x128xf32> to vector<2x8x128xf32>
    %cst_31 = arith.constant dense<0.000000e+00> : vector<8x128xf32>
    %34 = vector.multi_reduction <add>, %33, %cst_31 [0] : vector<2x8x128xf32> to vector<8x128xf32>
    %35 = arith.addf %31, %34 : vector<8x128xf32>
    %c0_32 = arith.constant 0 : index
    %c3_33 = arith.constant 3 : index
    %c0_34 = arith.constant 0 : index
    %c0_35 = arith.constant 0 : index
    %36 = vector.load %arg4[%c0_32, %c3_33, %c0_34, %c0_35] : memref<1x6x8x128xf32, #tpu.memory_space<vmem>>, vector<1x1x8x128xf32>
    %37 = vector.shape_cast %36 : vector<1x1x8x128xf32> to vector<8x128xf32>
    %38 = vector.shape_cast %35 : vector<8x128xf32> to vector<1x1x8x128xf32>
    tpu.vector_store %arg4[%c0_32, %c3_33, %c0_34, %c0_35], %38 {strides = array<i32>} : memref<1x6x8x128xf32, #tpu.memory_space<vmem>>, vector<1x1x8x128xf32>,
    %c0_36 = arith.constant 0 : index
    %c4 = arith.constant 4 : index
    %c0_37 = arith.constant 0 : index
    %c0_38 = arith.constant 0 : index
    %39 = vector.load %arg4[%c0_36, %c4, %c0_37, %c0_38] : memref<1x6x8x128xf32, #tpu.memory_space<vmem>>, vector<1x1x8x128xf32>
    %40 = vector.shape_cast %39 : vector<1x1x8x128xf32> to vector<8x128xf32>
    %41 = arith.mulf %4, %4 : vector<16x128xf32>
    %42 = vector.shape_cast %41 : vector<16x128xf32> to vector<2x8x128xf32>
    %cst_39 = arith.constant dense<0.000000e+00> : vector<8x128xf32>
    %43 = vector.multi_reduction <add>, %42, %cst_39 [0] : vector<2x8x128xf32> to vector<8x128xf32>
    %44 = arith.addf %40, %43 : vector<8x128xf32>
    %c0_40 = arith.constant 0 : index
    %c4_41 = arith.constant 4 : index
    %c0_42 = arith.constant 0 : index
    %c0_43 = arith.constant 0 : index
    %45 = vector.load %arg4[%c0_40, %c4_41, %c0_42, %c0_43] : memref<1x6x8x128xf32, #tpu.memory_space<vmem>>, vector<1x1x8x128xf32>
    %46 = vector.shape_cast %45 : vector<1x1x8x128xf32> to vector<8x128xf32>
    %47 = vector.shape_cast %44 : vector<8x128xf32> to vector<1x1x8x128xf32>
    tpu.vector_store %arg4[%c0_40, %c4_41, %c0_42, %c0_43], %47 {strides = array<i32>} : memref<1x6x8x128xf32, #tpu.memory_space<vmem>>, vector<1x1x8x128xf32>,
    %c0_44 = arith.constant 0 : index
    %c5 = arith.constant 5 : index
    %c0_45 = arith.constant 0 : index
    %c0_46 = arith.constant 0 : index
    %48 = vector.load %arg4[%c0_44, %c5, %c0_45, %c0_46] : memref<1x6x8x128xf32, #tpu.memory_space<vmem>>, vector<1x1x8x128xf32>
    %49 = vector.shape_cast %48 : vector<1x1x8x128xf32> to vector<8x128xf32>
    %50 = arith.subf %3, %4 : vector<16x128xf32>
    %51 = math.absf %50 : vector<16x128xf32>
    %52 = vector.shape_cast %51 : vector<16x128xf32> to vector<2x8x128xf32>
    %cst_47 = arith.constant dense<0.000000e+00> : vector<8x128xf32>
    %53 = vector.multi_reduction <add>, %52, %cst_47 [0] : vector<2x8x128xf32> to vector<8x128xf32>
    %54 = arith.addf %49, %53 : vector<8x128xf32>
    %c0_48 = arith.constant 0 : index
    %c5_49 = arith.constant 5 : index
    %c0_50 = arith.constant 0 : index
    %c0_51 = arith.constant 0 : index
    %55 = vector.load %arg4[%c0_48, %c5_49, %c0_50, %c0_51] : memref<1x6x8x128xf32, #tpu.memory_space<vmem>>, vector<1x1x8x128xf32>
    %56 = vector.shape_cast %55 : vector<1x1x8x128xf32> to vector<8x128xf32>
    %57 = vector.shape_cast %54 : vector<8x128xf32> to vector<1x1x8x128xf32>
    tpu.vector_store %arg4[%c0_48, %c5_49, %c0_50, %c0_51], %57 {strides = array<i32>} : memref<1x6x8x128xf32, #tpu.memory_space<vmem>>, vector<1x1x8x128xf32>,
    return
  }
  func.func @transform_0(%arg0: i32, %arg1: i32) -> (i32, i32) {
    %c1_i32 = arith.constant 1 : i32
    %0 = arith.muli %arg0, %c1_i32 : i32
    %1 = arith.addi %0, %arg1 : i32
    %c0_i32 = arith.constant 0 : i32
    %2 = arith.minsi %1, %c0_i32 : i32
    %c0_i32_0 = arith.constant 0 : i32
    %c0_i32_1 = arith.constant 0 : i32
    return %2, %c0_i32_0 : i32, i32
  }
  func.func @transform_1(%arg0: i32, %arg1: i32) -> (i32, i32) {
    %c1_i32 = arith.constant 1 : i32
    %0 = arith.muli %arg0, %c1_i32 : i32
    %1 = arith.addi %0, %arg1 : i32
    %c0_i32 = arith.constant 0 : i32
    %2 = arith.minsi %1, %c0_i32 : i32
    %c0_i32_0 = arith.constant 0 : i32
    %c0_i32_1 = arith.constant 0 : i32
    return %2, %c0_i32_0 : i32, i32
  }
  func.func @transform_2(%arg0: i32, %arg1: i32) -> (i32, i32, i32, i32) {
    %c0_i32 = arith.constant 0 : i32
    %c0_i32_0 = arith.constant 0 : i32
    %c0_i32_1 = arith.constant 0 : i32
    %c0_i32_2 = arith.constant 0 : i32
    return %arg0, %c0_i32, %c0_i32_0, %c0_i32_1 : i32, i32, i32, i32
  }
}

</mosaic_0001>

<bundles_post_ra>
// kernel: combined_pearson_mae_loss.1
= control target key start
LH: loop header
LB: loop body
LE: loop exit
PB: predicated region body
PF: predicated region fallthrough
CT: control target
= control target key end

     0   :  { %s200_s0 = inlined_call_operand.vmem [shape: f32[16,128], index: 0, kind: input, shape index: {}]   ;;  %s201_s1 = inlined_call_operand.vmem [shape: f32[16,128], index: 1, kind: input, shape index: {}]   ;;  %s202_s2 = inlined_call_operand.vmem [shape: f32[1,6,8,128], index: 2, kind: output, shape index: {}]  }
   0x1   :  { %v85_v0 = vld [vmem:[%s200_s0] sm:$0xff]  ;;  %v86_v1 = vld [vmem:[%s200_s0 + $0x8] sm:$0xff] }
   0x2   :  { %v87_v2 = vld [vmem:[%s201_s1] sm:$0xff]  ;;  %v90_v3 = vadd.f32 %v86_v1, %v85_v0  ;;  %v88_v4 = vld [vmem:[%s201_s1 + $0x8] sm:$0xff]  ;;  %v107_v6 = vmul.f32 %v85_v0, %v85_v0  ;;  %v108_v7 = vmul.f32 %v86_v1, %v86_v1 }
   0x3   :  { %v100_v5 = vmul.f32 %v87_v2, %v85_v0  ;;  %v95_v8 = vadd.f32 %v88_v4, %v87_v2  ;;  %v101_v9 = vmul.f32 %v88_v4, %v86_v1  ;;  %v114_v10 = vmul.f32 %v87_v2, %v87_v2 }
   0x4   :  { %v115_v11 = vmul.f32 %v88_v4, %v88_v4  ;;  %v109_v12 = vadd.f32 %v108_v7, %v107_v6  ;;  %v121_v13 = vsub.f32 %v85_v0, %v87_v2  ;;  %v122_v14 = vsub.f32 %v86_v1, %v88_v4  ;;  %92 = vst [vmem:[%s202_s2] sm:$0xff] %v90_v3 }
   0x5   :  { %v102_v15 = vadd.f32 %v101_v9, %v100_v5  ;;  %145 = vst [vmem:[%s202_s2 + $0x8] sm:$0xff] %v95_v8 }
   0x6   :  { %v116_v16 = vadd.f32 %v115_v11, %v114_v10  ;;  %v123_v17 = vand.u32 2147483647, %v121_v13  ;;  %v124_v18 = vand.u32 2147483647, %v122_v14  ;;  %149 = vst [vmem:[%s202_s2 + $0x18] sm:$0xff] %v109_v12 }
   0x7   :  { %147 = vst [vmem:[%s202_s2 + $0x10] sm:$0xff] %v102_v15 }
   0x8   :  { %v125_v19 = vadd.f32 %v124_v18, %v123_v17  ;;  %151 = vst [vmem:[%s202_s2 + $0x20] sm:$0xff] %v116_v16 }
   0xa   :  { %153 = vst [vmem:[%s202_s2 + $0x28] sm:$0xff] %v125_v19 }

</bundles_post_ra>
